<compile_context>
chip_gen: v6e
topology: v6e:2x2x1
jax: 0.10.0
libtpu: 0.0.40
codegen_flags: <defaults>
</compile_context>

<pallas_src>
import functools

import numpy as np

import jax
import jax.numpy as jnp
from jax.experimental import pallas as pl
from jax.experimental.pallas import tpu as pltpu

# ----- module hyper-parameters (globals in the original gpt.py) -----
N_EMBED = 32
NUM_HEADS = 4
HEAD_SIZE = N_EMBED // NUM_HEADS      # 8
BLOCK_SIZE = 8                        # max sequence length (tril buffer size)
DROPOUT_RATE = 0.1                    # unused (eval mode)


def _tensorcores_per_chip():
    """Best-effort TensorCore-per-chip count (v7x / v4 / v5p: 2, v5e / v6e: 1)."""
    try:
        kind = jax.devices()[0].device_kind.lower()
    except Exception:
        return 1
    return 2 if any(tag in kind for tag in ("v7", "v5p", "v4")) else 1


# ---------------------------------------------------------------------------
# Fused MHA kernel: QKV proj + head-mix + causal attention + un-mix + out proj
# ---------------------------------------------------------------------------
def _fused_mha_kernel(x_ref, mbd_ref, wqkv_ref, mask_ref, wpw_ref, bp_ref,
                      o_ref, *, heads, head_size):
    H, hs = heads, head_size
    bt, C = x_ref.shape              # rows of this block (batch_block * T), embed dim

    x = x_ref[...]                                                   # (bt, C)

    # ---- QKV projection fused with the `.view` head-mix permutation.
    # Replicate x block-diagonally (0/1 selector precomputed in the wrapper);
    # one matmul against the chunk-stacked weight yields q/k/v already in the
    # chunk-major mixed row order.  128-wide contraction keeps the MXU fed.
    x_rep = jnp.concatenate([x] * H, axis=1)                         # (bt, H*C)
    x_bd = jnp.concatenate([x_rep] * H, axis=0) * mbd_ref[...]       # (n, H*C)
    qkv_m = jnp.dot(x_bd, wqkv_ref[...],
                    preferred_element_type=jnp.float32)              # (n, 3*hs)
    q_m = qkv_m[:, 0:hs]             # scale C**-0.5 already folded into weights
    k_m = qkv_m[:, hs:2 * hs]
    v_m = qkv_m[:, 2 * hs:3 * hs]

    # ---- attention for all (batch, head) slabs in one matmul; the
    # block-diagonal + causal structure is a precomputed additive mask
    # (0 / -1e30, finite so a future pad_mask cannot produce NaN rows).
    s = jax.lax.dot_general(q_m, k_m, (((1,), (1,)), ((), ())),
                            preferred_element_type=jnp.float32)      # (n, n)
    s = s + mask_ref[...]
    s = s - jnp.max(s, axis=-1, keepdims=True)
    p = jnp.exp(s)
    # Reciprocal kept exact: it acts on an (n, 1) vector (negligible work) and
    # exactness keeps us comfortably inside the 1e-4 check (EUP approx is
    # ~2^-12 relative error, marginal against rtol=1e-4).
    p = p * pl.reciprocal(jnp.sum(p, axis=-1, keepdims=True), approx=False)
    # TODO(synk): attention-weight dropout omitted (eval-mode identity);
    #             optional pad_mask not wired in.

    # ---- P@V, the inverse `.view(B, T, C)` and the output projection fused:
    # z = P @ (V @ Wp_wide); the (bt, C) result is the sum of the H diagonal
    # (bt, C) blocks of z, plus the bias.  2 matmuls replace 1 + 4 + 4 in v2.
    vw = jnp.dot(v_m, wpw_ref[...], preferred_element_type=jnp.float32)  # (n, H*C)
    z = jnp.dot(p, vw, preferred_element_type=jnp.float32)               # (n, H*C)
    acc = bp_ref[...]                                                    # (1, C)
    for j in range(H):               # H == 4, static unroll; pure VPU adds
        acc = acc + z[j * bt:(j + 1) * bt, j * C:(j + 1) * C]
    o_ref[...] = acc


# ---------------------------------------------------------------------------
# Factory: pack weights / masks ONCE, return a jitted forward closure
# ---------------------------------------------------------------------------
def make_multi_head_attention(params, *, batch, seq, grid_over_batch=None):
    """Pack the MHA parameters once and return a jitted forward(x) function."""
    C, H, T = N_EMBED, NUM_HEADS, seq
    hs = C // H

    # shape validation (avoid a silently-wrong permutation on mismatched params)
    for name in ("Wq", "Wk", "Wv", "Wp"):
        if tuple(params[name].shape) != (C, C):
            raise ValueError(f"{name} must have shape ({C}, {C})")
    if tuple(params["bp"].shape) != (C,):
        raise ValueError(f"bp must have shape ({C},)")
    if C % H != 0:
        raise ValueError("N_EMBED must be divisible by NUM_HEADS")

    if grid_over_batch is None:       # use both TensorCores where they exist
        grid_over_batch = _tensorcores_per_chip() >= 2 and batch >= 2
    bb = 1 if grid_over_batch else batch   # batch samples per kernel block
    bt = bb * T                            # rows of x per block
    n = H * bt                             # mixed ("viewed") rows per block

    scale = float(C) ** (-0.5)        # gpt.py scales by the FULL embedding dim

    # ---- packed weights (one-time cost, NOT on the forward path) ----
    def _stack(w_t):                  # (C, C) -> (H*C, hs): chunk g in rows [g*C,(g+1)*C)
        return w_t.reshape(C, H, hs).transpose(1, 0, 2).reshape(H * C, hs)

    wqkv = jnp.concatenate([_stack(params["Wq"].T * scale),
                            _stack(params["Wk"].T),
                            _stack(params["Wv"].T)],
                           axis=1).astype(jnp.float32)               # (H*C, 3*hs)
    wp_wide = (params["Wp"].T.reshape(H, hs, C).transpose(1, 0, 2)
               .reshape(hs, H * C)).astype(jnp.float32)              # (hs, H*C)
    bp = params["bp"].reshape(1, C).astype(jnp.float32)              # (1, C)

    # ---- precomputed static constants (block-diag selector + causal mask) ----
    rho = np.arange(n)
    mbd = jnp.asarray(
        (np.arange(H * C)[None, :] // C) == (rho // bt)[:, None],
        dtype=jnp.float32)                                           # (n, H*C)

    g = rho // bt                     # column chunk of the `.view` permutation
    tau = rho % bt                    # projection-output row feeding this mixed row
    b_idx = tau // T
    ht = (tau % T) * H + g            # h*T + t of the (b, h, t) this row represents
    h_idx, t_idx = ht // T, ht % T
    ok = ((b_idx[:, None] == b_idx[None, :])
          & (h_idx[:, None] == h_idx[None, :])
          & (t_idx[None, :] <= t_idx[:, None]))
    mask = jnp.asarray(np.where(ok, 0.0, -1e30), dtype=jnp.float32)  # (n, n)

    kernel = functools.partial(_fused_mha_kernel, heads=H, head_size=hs)
    call = pl.pallas_call(
        kernel,
        out_shape=jax.ShapeDtypeStruct((batch * T, C), jnp.float32),
        grid=(batch // bb,),
        in_specs=[
            pl.BlockSpec((bt, C), lambda i: (i, 0)),          # x (per-block rows)
            pl.BlockSpec((n, H * C), lambda i: (0, 0)),       # block-diag selector
            pl.BlockSpec((H * C, 3 * hs), lambda i: (0, 0)),  # stacked QKV weight
            pl.BlockSpec((n, n), lambda i: (0, 0)),           # additive causal mask
            pl.BlockSpec((hs, H * C), lambda i: (0, 0)),      # widened out-proj weight
            pl.BlockSpec((1, C), lambda i: (0, 0)),           # out-proj bias
        ],
        out_specs=pl.BlockSpec((bt, C), lambda i: (i, 0)),
        compiler_params=pltpu.CompilerParams(
            dimension_semantics=("parallel",) if grid_over_batch else ("arbitrary",)),
    )

    @jax.jit
    def forward(x):
        if x.shape != (batch, T, C):
            raise ValueError(f"expected x of shape {(batch, T, C)}, got {x.shape}")
        out2d = call(x.reshape(batch * T, C), mbd, wqkv, mask, wp_wide, bp)
        return out2d.reshape(batch, T, C)

    return forward


# ---------------------------------------------------------------------------
# Pure-JAX reference (mirrors the PyTorch forward line by line)
# ---------------------------------------------------------------------------
def reference_mha(x, params):
    B, T, C = x.shape
    H = NUM_HEADS
    k = jnp.reshape(x @ params["Wk"].T, (B, H, T, C // H))
    q = jnp.reshape(x @ params["Wq"].T, (B, H, T, C // H))
    v = jnp.reshape(x @ params["Wv"].T, (B, H, T, C // H))
    wei = jnp.einsum("bhtd,bhsd->bhts", q, k) * (C ** (-0.5))
    tril = jnp.tril(jnp.ones((T, T)))
    wei = jnp.where(tril == 0, -jnp.inf, wei)
    wei = jax.nn.softmax(wei, axis=-1)
    out = jnp.einsum("bhts,bhsd->bhtd", wei, v)
    out = jnp.reshape(out, (B, T, C))
    return out @ params["Wp"].T + params["bp"]


if __name__ == "__main__":
    key = jax.random.PRNGKey(0)
    k0, k1, k2, k3, k4, k5 = jax.random.split(key, 6)

    B, T, C = 2, BLOCK_SIZE, N_EMBED

    # deterministic parameter init (PyTorch Linear shapes: (out, in))
    params = {
        "Wk": jax.random.normal(k0, (C, C), jnp.float32) * 0.05,
        "Wq": jax.random.normal(k1, (C, C), jnp.float32) * 0.05,
        "Wv": jax.random.normal(k2, (C, C), jnp.float32) * 0.05,
        "Wp": jax.random.normal(k3, (C, C), jnp.float32) * 0.05,
        "bp": jax.random.normal(k4, (C,), jnp.float32) * 0.05,
    }
    x = jax.random.normal(k5, (B, T, C), jnp.float32)

    ref = reference_mha(x, params)

    # Single fused block (the v5e/v6e single-TensorCore choice).
    fwd_fused = make_multi_head_attention(params, batch=B, seq=T,
                                          grid_over_batch=False)
    out_fused = jax.block_until_ready(fwd_fused(x))
    assert out_fused.shape == (B, T, C)
    assert jnp.allclose(out_fused, ref, atol=1e-4, rtol=1e-4), \
        "fused-path mismatch vs reference"

    # Batch-gridded path (the v7x / v4 / v5p two-TensorCore choice); also
    # correct (just serial) on single-core chips, so validate it here too.
    fwd_batched = make_multi_head_attention(params, batch=B, seq=T,
                                            grid_over_batch=True)
    out_batched = jax.block_until_ready(fwd_batched(x))
    assert jnp.allclose(out_batched, ref, atol=1e-4, rtol=1e-4), \
        "batched-path mismatch vs reference"

    print("KERNEL_OK")
</pallas_src>

<mosaic_0001>
module attributes {stable_mosaic.version = 11 : i64} {
  func.func @_fused_mha_kernel(%arg0: i32, %arg1: memref<16x32xf32, #tpu.memory_space<vmem>>, %arg2: memref<64x128xf32, #tpu.memory_space<vmem>>, %arg3: memref<128x24xf32, #tpu.memory_space<vmem>>, %arg4: memref<64x64xf32, #tpu.memory_space<vmem>>, %arg5: memref<8x128xf32, #tpu.memory_space<vmem>>, %arg6: memref<1x32xf32, #tpu.memory_space<vmem>>, %arg7: memref<16x32xf32, #tpu.memory_space<vmem>>) attributes {dimension_semantics = [#tpu.dimension_semantics<arbitrary>], iteration_bounds = array<i64: 1>, scalar_prefetch = 0 : i64, scratch_operands = 0 : i64, tpu.core_type = #tpu.core_type<tc>, window_params = [{transform_indices = @transform_0, window_bounds = array<i64: 16, 32>}, {pipeline_mode = #tpu.pipeline_mode<synchronous>, transform_indices = @transform_1, window_bounds = array<i64: 64, 128>}, {pipeline_mode = #tpu.pipeline_mode<synchronous>, transform_indices = @transform_2, window_bounds = array<i64: 128, 24>}, {pipeline_mode = #tpu.pipeline_mode<synchronous>, transform_indices = @transform_3, window_bounds = array<i64: 64, 64>}, {pipeline_mode = #tpu.pipeline_mode<synchronous>, transform_indices = @transform_4, window_bounds = array<i64: 8, 128>}, {pipeline_mode = #tpu.pipeline_mode<synchronous>, transform_indices = @transform_5, window_bounds = array<i64: 1, 32>}, {transform_indices = @transform_6, window_bounds = array<i64: 16, 32>}]} {
    %c0 = arith.constant 0 : index
    %c0_0 = arith.constant 0 : index
    %0 = vector.load %arg1[%c0, %c0_0] : memref<16x32xf32, #tpu.memory_space<vmem>>, vector<16x32xf32>
    %1 = tpu.concatenate %0, %0, %0, %0 in 1 : vector<16x32xf32>, vector<16x32xf32>, vector<16x32xf32>, vector<16x32xf32> -> vector<16x128xf32>
    %2 = tpu.concatenate %1, %1, %1, %1 in 0 : vector<16x128xf32>, vector<16x128xf32>, vector<16x128xf32>, vector<16x128xf32> -> vector<64x128xf32>
    %c0_1 = arith.constant 0 : index
    %c0_2 = arith.constant 0 : index
    %3 = vector.load %arg2[%c0_1, %c0_2] : memref<64x128xf32, #tpu.memory_space<vmem>>, vector<64x128xf32>
    %4 = arith.mulf %2, %3 : vector<64x128xf32>
    %c0_3 = arith.constant 0 : index
    %c0_4 = arith.constant 0 : index
    %5 = vector.load %arg3[%c0_3, %c0_4] : memref<128x24xf32, #tpu.memory_space<vmem>>, vector<128x24xf32>
    %cst = arith.constant dense<0.000000e+00> : vector<64x24xf32>
    %6 = tpu.matmul %4, %5, %cst {dimension_numbers = #tpu.dot_dimension_numbers<[1], [0], [0], [1], [0, 0, 1, 1], [], []>} : vector<64x128xf32>, vector<128x24xf32>, vector<64x24xf32> -> vector<64x24xf32>
    %7 = vector.extract_strided_slice %6 {offsets = [0, 0], sizes = [64, 8], strides = [1, 1]} : vector<64x24xf32> to vector<64x8xf32>
    %8 = vector.extract_strided_slice %6 {offsets = [0, 8], sizes = [64, 8], strides = [1, 1]} : vector<64x24xf32> to vector<64x8xf32>
    %9 = vector.extract_strided_slice %6 {offsets = [0, 16], sizes = [64, 8], strides = [1, 1]} : vector<64x24xf32> to vector<64x8xf32>
    %cst_5 = arith.constant dense<0.000000e+00> : vector<64x64xf32>
    %10 = tpu.matmul %7, %8, %cst_5 {dimension_numbers = #tpu.dot_dimension_numbers<[1], [1], [0], [0], [0, 0, 1, 0], [], []>} : vector<64x8xf32>, vector<64x8xf32>, vector<64x64xf32> -> vector<64x64xf32>
    %c0_6 = arith.constant 0 : index
    %c0_7 = arith.constant 0 : index
    %11 = vector.load %arg4[%c0_6, %c0_7] : memref<64x64xf32, #tpu.memory_space<vmem>>, vector<64x64xf32>
    %12 = arith.addf %10, %11 : vector<64x64xf32>
    %cst_8 = arith.constant dense<0xFF800000> : vector<64xf32>
    %13 = vector.multi_reduction <maximumf>, %12, %cst_8 [1] : vector<64x64xf32> to vector<64xf32>
    %14 = vector.shape_cast %13 : vector<64xf32> to vector<64x1xf32>
    %15 = vector.broadcast %14 : vector<64x1xf32> to vector<64x64xf32>
    %16 = arith.subf %12, %15 : vector<64x64xf32>
    %17 = math.exp %16 : vector<64x64xf32>
    %cst_9 = arith.constant dense<0.000000e+00> : vector<64xf32>
    %18 = vector.multi_reduction <add>, %17, %cst_9 [1] : vector<64x64xf32> to vector<64xf32>
    %19 = vector.shape_cast %18 : vector<64xf32> to vector<64x1xf32>
    %20 = tpu.reciprocal %19 : vector<64x1xf32> -> vector<64x1xf32>
    %21 = vector.broadcast %20 : vector<64x1xf32> to vector<64x64xf32>
    %22 = arith.mulf %17, %21 : vector<64x64xf32>
    %c0_10 = arith.constant 0 : index
    %c0_11 = arith.constant 0 : index
    %23 = vector.load %arg5[%c0_10, %c0_11] : memref<8x128xf32, #tpu.memory_space<vmem>>, vector<8x128xf32>
    %cst_12 = arith.constant dense<0.000000e+00> : vector<64x128xf32>
    %24 = tpu.matmul %9, %23, %cst_12 {dimension_numbers = #tpu.dot_dimension_numbers<[1], [0], [0], [1], [0, 0, 1, 1], [], []>} : vector<64x8xf32>, vector<8x128xf32>, vector<64x128xf32> -> vector<64x128xf32>
    %cst_13 = arith.constant dense<0.000000e+00> : vector<64x128xf32>
    %25 = tpu.matmul %22, %24, %cst_13 {dimension_numbers = #tpu.dot_dimension_numbers<[1], [0], [0], [1], [0, 0, 1, 1], [], []>} : vector<64x64xf32>, vector<64x128xf32>, vector<64x128xf32> -> vector<64x128xf32>
    %c0_14 = arith.constant 0 : index
    %c0_15 = arith.constant 0 : index
    %26 = vector.load %arg6[%c0_14, %c0_15] : memref<1x32xf32, #tpu.memory_space<vmem>>, vector<1x32xf32>
    %27 = vector.extract_strided_slice %25 {offsets = [0, 0], sizes = [16, 32], strides = [1, 1]} : vector<64x128xf32> to vector<16x32xf32>
    %28 = vector.broadcast %26 : vector<1x32xf32> to vector<16x32xf32>
    %29 = arith.addf %28, %27 : vector<16x32xf32>
    %30 = vector.extract_strided_slice %25 {offsets = [16, 32], sizes = [16, 32], strides = [1, 1]} : vector<64x128xf32> to vector<16x32xf32>
    %31 = arith.addf %29, %30 : vector<16x32xf32>
    %32 = vector.extract_strided_slice %25 {offsets = [32, 64], sizes = [16, 32], strides = [1, 1]} : vector<64x128xf32> to vector<16x32xf32>
    %33 = arith.addf %31, %32 : vector<16x32xf32>
    %34 = vector.extract_strided_slice %25 {offsets = [48, 96], sizes = [16, 32], strides = [1, 1]} : vector<64x128xf32> to vector<16x32xf32>
    %35 = arith.addf %33, %34 : vector<16x32xf32>
    %c0_16 = arith.constant 0 : index
    %c0_17 = arith.constant 0 : index
    %36 = vector.load %arg7[%c0_16, %c0_17] : memref<16x32xf32, #tpu.memory_space<vmem>>, vector<16x32xf32>
    tpu.vector_store %arg7[%c0_16, %c0_17], %35 {strides = array<i32>} : memref<16x32xf32, #tpu.memory_space<vmem>>, vector<16x32xf32>,
    return
  }
  func.func @transform_0(%arg0: i32) -> (i32, i32) {
    %c0_i32 = arith.constant 0 : i32
    %c0_i32_0 = arith.constant 0 : i32
    return %arg0, %c0_i32 : i32, i32
  }
  func.func @transform_1(%arg0: i32) -> (i32, i32) {
    %c0_i32 = arith.constant 0 : i32
    %c0_i32_0 = arith.constant 0 : i32
    %c0_i32_1 = arith.constant 0 : i32
    return %c0_i32, %c0_i32_0 : i32, i32
  }
  func.func @transform_2(%arg0: i32) -> (i32, i32) {
    %c0_i32 = arith.constant 0 : i32
    %c0_i32_0 = arith.constant 0 : i32
    %c0_i32_1 = arith.constant 0 : i32
    return %c0_i32, %c0_i32_0 : i32, i32
  }
  func.func @transform_3(%arg0: i32) -> (i32, i32) {
    %c0_i32 = arith.constant 0 : i32
    %c0_i32_0 = arith.constant 0 : i32
    %c0_i32_1 = arith.constant 0 : i32
    return %c0_i32, %c0_i32_0 : i32, i32
  }
  func.func @transform_4(%arg0: i32) -> (i32, i32) {
    %c0_i32 = arith.constant 0 : i32
    %c0_i32_0 = arith.constant 0 : i32
    %c0_i32_1 = arith.constant 0 : i32
    return %c0_i32, %c0_i32_0 : i32, i32
  }
  func.func @transform_5(%arg0: i32) -> (i32, i32) {
    %c0_i32 = arith.constant 0 : i32
    %c0_i32_0 = arith.constant 0 : i32
    %c0_i32_1 = arith.constant 0 : i32
    return %c0_i32, %c0_i32_0 : i32, i32
  }
  func.func @transform_6(%arg0: i32) -> (i32, i32) {
    %c0_i32 = arith.constant 0 : i32
    %c0_i32_0 = arith.constant 0 : i32
    return %arg0, %c0_i32 : i32, i32
  }
}

</mosaic_0001>

<bundles_post_ra>
// kernel: forward.1
= control target key start
LH: loop header
LB: loop body
LE: loop exit
PB: predicated region body
PF: predicated region fallthrough
CT: control target
= control target key end

     0   :  { %11 = vsyncpa [#allocation3], 0  ;;  %s1394_s0 = inlined_call_operand.hbm [shape: f32[16,32], index: 0, kind: input, shape index: {}]   ;;  %s1395_s1 = inlined_call_operand.hbm [shape: f32[64,128], index: 1, kind: input, shape index: {}]   ;;  %s1396_s2 = inlined_call_operand.hbm [shape: f32[128,24], index: 2, kind: input, shape index: {}]   ;;  %s1397_s3 = inlined_call_operand.hbm [shape: f32[64,64], index: 3, kind: input, shape index: {}]   ;;  %s1398_s4 = inlined_call_operand.vmem [shape: f32[8,128], index: 4, kind: input, shape index: {}]   ;;  %s1399_s5 = inlined_call_operand.vmem [shape: f32[1,32], index: 5, kind: input, shape index: {}]   ;;  %s1400_s6 = inlined_call_operand.hbm [shape: f32[16,32], index: 6, kind: output, shape index: {}]  }
   0x1   :  { %12 = vsyncpa [#allocation6], 0 }
   0x2   :  { %13 = vsyncpa [#allocation9], 0 }
   0x3   :  { %14 = vsyncpa [#allocation4], 0  ;;  %s1196_s21 = smov [#allocation5]   ;;  %s1197_s23 = smov [#allocation2]  }
   0x4   :  { %s32_s22 = sshll.u32 %s1196_s21, 4  ;;  %s20_s24 = sshll.u32 %s1197_s23, 4  ;;  %s33_s22 = int_to_ptr.vmem [resolvable:$true] %s32_s22  ;;  %s21_s24 = int_to_ptr.vmem [resolvable:$true] %s20_s24 }
   0x5   :  { %s1096_s25 = scalar_lea.vmem %s33_s22, 1024  ;;  %p1101_p1 = scmp.lt.s32.totalorder %s33_s22, %s33_s22 }
   0x6   :  { %p1097_p0 = scmp.ne.s32.totalorder %s33_s22, %s1096_s25  ;;  %p1102_p2 = scmp.lt.s32.totalorder %s1096_s25, %s1096_s25 }
   0x8   :  { %p1103_p3 = por %p1102_p2, %p1101_p1 }
   0xa   :  { %p1104_p4 = pnand %p1103_p3, %p1097_p0 }
   0xc   :  { %1107 = shalt.err (!%p1104_p4)
}
   0xd   :  { %s1198_s26 = smov 128   ;;  %s1199_s27 = smov 8  }
   0xe   :  { %38 = dma.hbm_to_vmem [thread:$0]  %s1395_s1, 1024, %s33_s22, [#allocation6], %s1198_s26, %s1198_s26, %s1199_s27  }
   0xf   :  { %s1116_s30 = scalar_lea.vmem %s21_s24, 256  ;;  %p1121_p6 = scmp.lt.s32.totalorder %s21_s24, %s21_s24 }
  0x10   :  { %p1117_p5 = scmp.ne.s32.totalorder %s21_s24, %s1116_s30  ;;  %p1122_p7 = scmp.lt.s32.totalorder %s1116_s30, %s1116_s30 }
  0x12   :  { %p1123_p8 = por %p1122_p7, %p1121_p6 }
  0x14   :  { %p1124_p9 = pnand %p1123_p8, %p1117_p5 }
  0x16   :  { %1127 = shalt.err (!%p1124_p9)
}
  0x17   :  { %26 = dma.hbm_to_vmem [thread:$0]  %s1394_s0, 256, %s21_s24, [#allocation3], %s1198_s26, %s1198_s26, %s1199_s27  }
  0x18   :  { %s1200_s9 = smov [#allocation7]   ;;  %s1201_s11 = smov [#allocation8]  }
  0x19   :  { %s44_s10 = sshll.u32 %s1200_s9, 4  ;;  %s56_s12 = sshll.u32 %s1201_s11, 4  ;;  %s45_s10 = int_to_ptr.vmem [resolvable:$true] %s44_s10  ;;  %s57_s12 = int_to_ptr.vmem [resolvable:$true] %s56_s12 }
  0x1a   :  { %s1136_s1 = scalar_lea.vmem %s45_s10, 2048  ;;  %p1141_p11 = scmp.lt.s32.totalorder %s45_s10, %s45_s10 }
  0x1b   :  { %p1137_p10 = scmp.ne.s32.totalorder %s45_s10, %s1136_s1  ;;  %p1142_p12 = scmp.lt.s32.totalorder %s1136_s1, %s1136_s1 }
  0x1d   :  { %p1143_p13 = por %p1142_p12, %p1141_p11 }
  0x1f   :  { %p1144_p0 = pnand %p1143_p13, %p1137_p10 }
  0x21   :  { %1147 = shalt.err (!%p1144_p0)
}
  0x22   :  { %50 = dma.hbm_to_vmem [thread:$0]  %s1396_s2, 2048, %s45_s10, [#allocation6], %s1198_s26, %s1198_s26, %s1199_s27  }
  0x23   :  { %s1156_s0 = scalar_lea.vmem %s57_s12, 1024  ;;  %p1161_p2 = scmp.lt.s32.totalorder %s57_s12, %s57_s12 }
  0x24   :  { %p1157_p1 = scmp.ne.s32.totalorder %s57_s12, %s1156_s0  ;;  %p1162_p3 = scmp.lt.s32.totalorder %s1156_s0, %s1156_s0 }
  0x26   :  { %p1163_p4 = por %p1162_p3, %p1161_p2 }
  0x28   :  { %p1164_p5 = pnand %p1163_p4, %p1157_p1 }
  0x2a   :  { %1167 = shalt.err (!%p1164_p5)
}
  0x2b   :  { %62 = dma.hbm_to_vmem [thread:$0]  %s1397_s3, 1024, %s57_s12, [#allocation9], %s1198_s26, %s1198_s26, %s1199_s27  }
  0x2c   :  { %1188 = dma.done.wait [#allocation3], 256  }
  0x2d   :  { %1189 = vsyncadd [#allocation3], 4294967040 }
  0x2e   :  { %1190 = dma.done.wait [#allocation6], 3072  }
  0x2f   :  { %1191 = vsyncadd [#allocation6], 4294964224 }
  0x30   :  { %1192 = dma.done.wait [#allocation9], 1024  }
  0x31   :  { %1193 = vsyncadd [#allocation9], 4294966272  ;;  %v1267_v0 = vld [vmem:[#allocation2] sm:$0xff]  ;;  %v141_v1 = vld [vmem:[#allocation7 + $0x78] sm:$0xff]  ;;  %s1202_s2 = smov 64   ;;  %s1203_s17 = smov 32  }
  0x32   :  { %89 = vrot.lane.b32.xlu1 %v1267_v0, %s1202_s2  ;;  %83 = vrot.lane.b32.xlu0 %v1267_v0, %s1203_s17  ;;  %v140_v2 = vld [vmem:[#allocation7 + $0x70] sm:$0xff]  ;;  %v80_v3 = vld [vmem:[#allocation2 + $0x8] sm:$0xff]  ;;  %v139_v4 = vld [vmem:[#allocation7 + $0x68] sm:$0xff]  ;;  %s1204_s3 = smov 96   ;;  %vm101_vm0 = vcmask 261120   ;;  %vm104_vm1 = vcmask 523264  }
  0x33   :  { %930 = vmatprep.subr.mxu0 %v141_v1  ;;  %v138_v5 = vld [vmem:[#allocation7 + $0x60] sm:$0xff]  ;;  %v137_v6 = vld [vmem:[#allocation7 + $0x58] sm:$0xff]  ;;  %v136_v7 = vld [vmem:[#allocation7 + $0x50] sm:$0xff]  ;;  %vm107_vm2 = vcmask 785408   ;;  %vm279_vm3 = vcmask 64512   ;;  %s1205_s18 = smov 120  }
  0x34   :  { %931 = vmatpush3.msra.mxu0 %v141_v1  ;;  %v135_v8 = vld [vmem:[#allocation7 + $0x48] sm:$0xff]  ;;  %v134_v9 = vld [vmem:[#allocation7 + $0x40] sm:$0xff]  ;;  %v133_v10 = vld [vmem:[#allocation7 + $0x38] sm:$0xff]  ;;  %s1206_s21 = smov 112   ;;  %s1207_s23 = smov [#allocation10]  }
  0x35   :  { %932 = vmatprep.subr.mxu0 %v140_v2  ;;  %v132_v11 = vld [vmem:[#allocation7 + $0x30] sm:$0xff]  ;;  %v131_v12 = vld [vmem:[#allocation7 + $0x28] sm:$0xff]  ;;  %v130_v13 = vld [vmem:[#allocation7 + $0x20] sm:$0xff]  ;;  %s818_s24 = sshll.u32 %s1207_s23, 4  ;;  %s819_s24 = int_to_ptr.vmem [resolvable:$true] %s818_s24 }
  0x36   :  { %91 = vrot.lane.b32.xlu1 %v80_v3, %s1202_s2  ;;  %85 = vrot.lane.b32.xlu0 %v80_v3, %s1203_s17  ;;  %v129_v14 = vld [vmem:[#allocation7 + $0x18] sm:$0xff]  ;;  %v128_v15 = vld [vmem:[#allocation7 + $0x10] sm:$0xff]  ;;  %v127_v16 = vld [vmem:[#allocation7 + $0x8] sm:$0xff]  ;;  %p1173_p7 = scmp.lt.s32.totalorder %s819_s24, %s819_s24 }
  0x37   :  { %933 = vmatpush3.msra.mxu0 %v140_v2  ;;  %v126_v17 = vld [vmem:[#allocation7] sm:$0xff]  ;;  %v111_v25 = vld [vmem:[#allocation5 + $0x8] sm:$0xff]  ;;  %v112_v32 = vld [vmem:[#allocation5 + $0x10] sm:$0xff] }
  0x38   :  { %934 = vmatprep.subr.mxu0 %v139_v4  ;;  %v110_v24 = vld [vmem:[#allocation5] sm:$0xff]  ;;  %v113_v36 = vld [vmem:[#allocation5 + $0x18] sm:$0xff]  ;;  %v115_v40 = vld [vmem:[#allocation5 + $0x28] sm:$0xff] }
  0x39   :  { %935 = vmatpush3.msra.mxu0 %v139_v4  ;;  %v114_v37 = vld [vmem:[#allocation5 + $0x20] sm:$0xff]  ;;  %v116_v41 = vld [vmem:[#allocation5 + $0x30] sm:$0xff]  ;;  %v117_v44 = vld [vmem:[#allocation5 + $0x38] sm:$0xff] }
  0x3a   :  { %97 = vrot.lane.b32.xlu1 %v80_v3, %s1204_s3  ;;  %95 = vrot.lane.b32.xlu0 %v1267_v0, %s1204_s3  ;;  %v505_v54 = vld [vmem:[%s1398_s4] sm:$0xff] }
  0x3b   :  { %936 = vmatprep.subr.mxu0 %v138_v5 }
  0x3c   :  { %937 = vmatpush3.msra.mxu0 %v138_v5 }
  0x3d   :  { %938 = vmatprep.subr.mxu0 %v137_v6 }
  0x3e   :  { %939 = vmatpush3.msra.mxu0 %v137_v6 }
  0x3f   :  { %940 = vmatprep.subr.mxu0 %v136_v7 }
  0x40   :  { %941 = vmatpush3.msra.mxu0 %v136_v7 }
  0x41   :  { %942 = vmatprep.subr.mxu0 %v135_v8 }
  0x42   :  { %943 = vmatpush3.msra.mxu0 %v135_v8 }
  0x43   :  { %944 = vmatprep.subr.mxu0 %v134_v9 }
  0x44   :  { %945 = vmatpush3.msra.mxu0 %v134_v9 }
  0x45   :  { %946 = vmatprep.subr.mxu0 %v133_v10 }
  0x46   :  { %947 = vmatpush3.msra.mxu0 %v133_v10 }
  0x47   :  { %948 = vmatprep.subr.mxu0 %v132_v11 }
  0x48   :  { %949 = vmatpush3.msra.mxu0 %v132_v11 }
  0x49   :  { %950 = vmatprep.subr.mxu0 %v131_v12 }
  0x4a   :  { %951 = vmatpush3.msra.mxu0 %v131_v12 }
  0x4b   :  { %952 = vmatprep.subr.mxu0 %v130_v13 }
  0x4c   :  { %953 = vmatpush3.msra.mxu0 %v130_v13 }
  0x4d   :  { %954 = vmatprep.subr.mxu0 %v129_v14 }
  0x4e   :  { %955 = vmatpush3.msra.mxu0 %v129_v14  ;;  %v248_v14 = vld [vmem:[#allocation8 + $0x8] sm:$0xff] }
  0x4f   :  { %956 = vmatprep.subr.mxu0 %v128_v15 }
  0x50   :  { %957 = vmatpush3.msra.mxu0 %v128_v15 }
  0x51   :  { %958 = vmatprep.subr.mxu0 %v127_v16 }
  0x52   :  { %959 = vmatpush3.msra.mxu0 %v127_v16 }
  0x53   :  { %960 = vmatprep.subr.mxu0 %v126_v17 }
  0x54   :  { %961 = vmatpush3.msra.mxu0 %v126_v17  ;;  %v247_v17 = vld [vmem:[#allocation8] sm:$0xff] }
  0x55   :  { %1002 = vmatprep.subr.mxu0 %v505_v54 }
  0xa4   :  { %v90_v18 = vpop.permute.xlu1 %89  ;;  %v84_v19 = vpop.permute.xlu0 %83 }
  0xa5   :  { %v102_v22 = vsel %vm101_vm0, %v1267_v0, %v84_v19 }
  0xa6   :  { %v105_v28 = vsel %vm104_vm1, %v102_v22, %v90_v18 }
  0xa8   :  { %v92_v20 = vpop.permute.xlu1 %91  ;;  %v86_v21 = vpop.permute.xlu0 %85 }
  0xa9   :  { %v103_v23 = vsel %vm101_vm0, %v80_v3, %v86_v21 }
  0xaa   :  { %v106_v27 = vsel %vm104_vm1, %v103_v23, %v92_v20  ;;  %v249_v23 = vld [vmem:[#allocation8 + $0x10] sm:$0xff] }
  0xac   :  { %v98_v26 = vpop.permute.xlu1 %97  ;;  %v96_v29 = vpop.permute.xlu0 %95 }
  0xad   :  { %v109_v30 = vsel %vm107_vm2, %v106_v27, %v98_v26  ;;  %v108_v31 = vsel %vm107_vm2, %v105_v28, %v96_v29  ;;  %v251_v29 = vld [vmem:[#allocation8 + $0x20] sm:$0xff] }
  0xae   :  { %v118_v33 = vmul.f32 %v110_v24, %v108_v31  ;;  %v119_v34 = vmul.f32 %v111_v25, %v109_v30  ;;  %v120_v35 = vmul.f32 %v112_v32, %v108_v31  ;;  %v121_v38 = vmul.f32 %v113_v36, %v109_v30  ;;  %v250_v25 = vld [vmem:[#allocation8 + $0x18] sm:$0xff]  ;;  %v252_v32 = vld [vmem:[#allocation8 + $0x28] sm:$0xff]  ;;  %v253_v36 = vld [vmem:[#allocation8 + $0x30] sm:$0xff] }
  0xaf   :  { %v122_v39 = vmul.f32 %v114_v37, %v108_v31  ;;  %v123_v42 = vmul.f32 %v115_v40, %v109_v30  ;;  %v124_v43 = vmul.f32 %v116_v41, %v108_v31  ;;  %v125_v45 = vmul.f32 %v117_v44, %v109_v30  ;;  %v254_v40 = vld [vmem:[#allocation8 + $0x38] sm:$0xff] }
  0xb0   :  { %962 = vmatprep.mubr.f32.mxu0 %v118_v33 }
  0xb1   :  { %963 = vmatmul.mubr.f32.vlgmr.msra.gmra.mxu0 %v119_v34 }
  0xb2   :  { %965 = vmatprep.mubr.f32.mxu0 %v120_v35  ;;  %1003 = vmatpush3.msra.mxu0 %v505_v54 }
  0xb5   :  { %966 = vmatmul.mubr.f32.gmra.mxu0 %v121_v38 }
  0xb6   :  { %968 = vmatprep.mubr.f32.mxu0 %v122_v39 }
  0xb9   :  { %969 = vmatmul.mubr.f32.gmra.mxu0 %v123_v42 }
  0xba   :  { %971 = vmatprep.mubr.f32.mxu0 %v124_v43 }
  0xbd   :  { %972 = vmatmul.mubr.f32.gmra.mxu0 %v125_v45 }
 0x171   :  { %v1283_v46 = vpop.f32.mrf.mxu0 }
 0x173   :  { %v208_v47 = vpop.f32.mrf.mxu0 }
 0x174   :  { %990 = vmatprep.mubr.msk.f32.mxu1 %vm279_vm3, %v208_v47 }
 0x175   :  { %v1286_v48 = vpop.f32.mrf.mxu0 }
 0x177   :  { %v1288_v49 = vpop.f32.mrf.mxu0 }
 0x179   :  { %v1290_v50 = vpop.f32.mrf.mxu0 }
 0x17b   :  { %v1292_v51 = vpop.f32.mrf.mxu0 }
 0x17d   :  { %v1294_v52 = vpop.f32.mrf.mxu0 }
 0x17e   :  { %277 = vrot.lane.b32.xlu0 %v1294_v52, %s1205_s18 }
 0x17f   :  { %v1297_v53 = vpop.f32.mrf.mxu0 }
 0x180   :  { %275 = vrot.lane.b32.xlu1 %v1297_v53, %s1205_s18 }
 0x182   :  { %273 = vrot.lane.b32.xlu0 %v1290_v50, %s1205_s18 }
 0x184   :  { %271 = vrot.lane.b32.xlu1 %v1292_v51, %s1205_s18 }
 0x186   :  { %269 = vrot.lane.b32.xlu0 %v1286_v48, %s1205_s18 }
 0x188   :  { %267 = vrot.lane.b32.xlu1 %v1288_v49, %s1205_s18 }
 0x18a   :  { %265 = vrot.lane.b32.xlu0 %v1283_v46, %s1205_s18 }
 0x18c   :  { %263 = vrot.lane.b32.xlu1 %v208_v47, %s1205_s18 }
 0x18e   :  { %506 = vrot.lane.b32.xlu0 %v208_v47, %s1206_s21 }
 0x190   :  { %508 = vrot.lane.b32.xlu1 %v1283_v46, %s1206_s21 }
 0x192   :  { %510 = vrot.lane.b32.xlu0 %v1288_v49, %s1206_s21 }
 0x194   :  { %512 = vrot.lane.b32.xlu1 %v1286_v48, %s1206_s21 }
 0x196   :  { %514 = vrot.lane.b32.xlu0 %v1292_v51, %s1206_s21 }
 0x198   :  { %516 = vrot.lane.b32.xlu1 %v1290_v50, %s1206_s21 }
 0x19a   :  { %518 = vrot.lane.b32.xlu0 %v1297_v53, %s1206_s21 }
 0x19c   :  { %520 = vrot.lane.b32.xlu1 %v1294_v52, %s1206_s21 }
 0x1f0   :  { %v278_v55 = vpop.permute.xlu0 %277 }
 0x1f1   :  { %974 = vmatprep.subr.msk.mxu1 %vm279_vm3, %v278_v55 }
 0x1f2   :  { %975 = vmatpush3.xpose.msk.msra.mxu1 %vm279_vm3, %v278_v55  ;;  %v276_v56 = vpop.permute.xlu1 %275 }
 0x1f3   :  { %976 = vmatprep.subr.msk.mxu1 %vm279_vm3, %v276_v56 }
 0x1f4   :  { %v274_v57 = vpop.permute.xlu0 %273 }
 0x1f6   :  { %977 = vmatpush3.xpose.msk.msra.mxu1 %vm279_vm3, %v276_v56  ;;  %v272_v58 = vpop.permute.xlu1 %271 }
 0x1f7   :  { %978 = vmatprep.subr.msk.mxu1 %vm279_vm3, %v274_v57 }
 0x1f8   :  { %v270_v59 = vpop.permute.xlu0 %269 }
 0x1fa   :  { %979 = vmatpush3.xpose.msk.msra.mxu1 %vm279_vm3, %v274_v57  ;;  %v268_v60 = vpop.permute.xlu1 %267 }
 0x1fb   :  { %980 = vmatprep.subr.msk.mxu1 %vm279_vm3, %v272_v58 }
 0x1fc   :  { %v266_v61 = vpop.permute.xlu0 %265 }
 0x1fe   :  { %981 = vmatpush3.xpose.msk.msra.mxu1 %vm279_vm3, %v272_v58  ;;  %v264_v62 = vpop.permute.xlu1 %263 }
 0x1ff   :  { %982 = vmatprep.subr.msk.mxu1 %vm279_vm3, %v270_v59 }
 0x200   :  { %v507_v63 = vpop.permute.xlu0 %506 }
 0x201   :  { %1004 = vmatprep.mubr.msk.f32.mxu0 %vm279_vm3, %v507_v63 }
 0x202   :  { %983 = vmatpush3.xpose.msk.msra.mxu1 %vm279_vm3, %v270_v59  ;;  %v509_v0 = vpop.permute.xlu1 %508 }
 0x203   :  { %984 = vmatprep.subr.msk.mxu1 %vm279_vm3, %v268_v60  ;;  %1005 = vmatmul.mubr.msk.f32.vlgmr.msra.gmra.mxu0 %vm279_vm3, %v509_v0 }
 0x204   :  { %v511_v1 = vpop.permute.xlu0 %510 }
 0x205   :  { %1007 = vmatprep.mubr.msk.f32.mxu0 %vm279_vm3, %v511_v1 }
 0x206   :  { %985 = vmatpush3.xpose.msk.msra.mxu1 %vm279_vm3, %v268_v60  ;;  %v513_v2 = vpop.permute.xlu1 %512 }
 0x207   :  { %986 = vmatprep.subr.msk.mxu1 %vm279_vm3, %v266_v61  ;;  %1008 = vmatmul.mubr.msk.f32.gmra.mxu0 %vm279_vm3, %v513_v2 }
 0x208   :  { %v515_v3 = vpop.permute.xlu0 %514 }
 0x209   :  { %1010 = vmatprep.mubr.msk.f32.mxu0 %vm279_vm3, %v515_v3 }
 0x20a   :  { %987 = vmatpush3.xpose.msk.msra.mxu1 %vm279_vm3, %v266_v61  ;;  %v517_v4 = vpop.permute.xlu1 %516 }
 0x20b   :  { %988 = vmatprep.subr.msk.mxu1 %vm279_vm3, %v264_v62  ;;  %1011 = vmatmul.mubr.msk.f32.gmra.mxu0 %vm279_vm3, %v517_v4 }
 0x20c   :  { %v519_v5 = vpop.permute.xlu0 %518 }
 0x20d   :  { %1013 = vmatprep.mubr.msk.f32.mxu0 %vm279_vm3, %v519_v5 }
 0x20e   :  { %989 = vmatpush3.xpose.msk.msra.mxu1 %vm279_vm3, %v264_v62  ;;  %v521_v6 = vpop.permute.xlu1 %520 }
 0x20f   :  { %1014 = vmatmul.mubr.msk.f32.gmra.mxu0 %vm279_vm3, %v521_v6 }
 0x211   :  { %991 = vmatmul.mubr.msk.f32.vlgmr.msra.gmra.mxu1 %vm279_vm3, %v1283_v46 }
 0x212   :  { %993 = vmatprep.mubr.msk.f32.mxu1 %vm279_vm3, %v1288_v49 }
 0x215   :  { %994 = vmatmul.mubr.msk.f32.gmra.mxu1 %vm279_vm3, %v1286_v48 }
 0x216   :  { %996 = vmatprep.mubr.msk.f32.mxu1 %vm279_vm3, %v1292_v51 }
 0x219   :  { %997 = vmatmul.mubr.msk.f32.gmra.mxu1 %vm279_vm3, %v1290_v50 }
 0x21a   :  { %999 = vmatprep.mubr.msk.f32.mxu1 %vm279_vm3, %v1297_v53 }
 0x21d   :  { %1000 = vmatmul.mubr.msk.f32.gmra.mxu1 %vm279_vm3, %v1294_v52 }
 0x2c3   :  { %v1006_v7 = vpop.f32.mrf.mxu0 }
 0x2c5   :  { %v604_v8 = vpop.f32.mrf.mxu0 }
 0x2c7   :  { %v1009_v9 = vpop.f32.mrf.mxu0 }
 0x2c9   :  { %v614_v10 = vpop.f32.mrf.mxu0 }
 0x2cb   :  { %v1012_v11 = vpop.f32.mrf.mxu0 }
 0x2cd   :  { %v624_v12 = vpop.f32.mrf.mxu0 }
 0x2cf   :  { %v1015_v13 = vpop.f32.mrf.mxu0 }
 0x2d0   :  { %1016 = vmatprep.subr.mxu1 %v1015_v13 }
 0x2d1   :  { %v992_v15 = vpop.f32.mrf.mxu1  ;;  %v634_v16 = vpop.f32.mrf.mxu0  ;;  %1017 = vmatpush3.msra.mxu1 %v1015_v13 }
 0x2d2   :  { %v384_v18 = vadd.f32 %v992_v15, %v248_v14  ;;  %1018 = vmatprep.subr.mxu1 %v634_v16 }
 0x2d3   :  { %v378_v19 = vpop.f32.mrf.mxu1  ;;  %1019 = vmatpush3.msra.mxu1 %v634_v16 }
 0x2d4   :  { %v379_v20 = vadd.f32 %v378_v19, %v247_v17  ;;  %1020 = vmatprep.subr.mxu1 %v1012_v11  ;;  %v420_v21 = vsel %vm104_vm1, %v384_v18, -inf }
 0x2d5   :  { %421 = vmax.xlane.f32.xlu1 %v420_v21  ;;  %v995_v22 = vpop.f32.mrf.mxu1  ;;  %1021 = vmatpush3.msra.mxu1 %v1012_v11 }
 0x2d6   :  { %1022 = vmatprep.subr.mxu1 %v624_v12  ;;  %v417_v24 = vsel %vm104_vm1, %v379_v20, -inf  ;;  %v394_v30 = vadd.f32 %v995_v22, %v250_v25 }
 0x2d7   :  { %v388_v26 = vpop.f32.mrf.mxu1  ;;  %418 = vmax.xlane.f32.xlu0 %v417_v24  ;;  %1023 = vmatpush3.msra.mxu1 %v624_v12 }
 0x2d8   :  { %v389_v27 = vadd.f32 %v388_v26, %v249_v23  ;;  %1024 = vmatprep.subr.mxu1 %v1009_v9  ;;  %v426_v39 = vsel %vm104_vm1, %v394_v30, -inf }
 0x2d9   :  { %v998_v28 = vpop.f32.mrf.mxu1  ;;  %1025 = vmatpush3.msra.mxu1 %v1009_v9 }
 0x2da   :  { %1026 = vmatprep.subr.mxu1 %v614_v10  ;;  %v423_v31 = vsel %vm104_vm1, %v389_v27, -inf  ;;  %v404_v37 = vadd.f32 %v998_v28, %v252_v32 }
 0x2db   :  { %v398_v33 = vpop.f32.mrf.mxu1  ;;  %424 = vmax.xlane.f32.xlu0 %v423_v31  ;;  %1027 = vmatpush3.msra.mxu1 %v614_v10 }
 0x2dc   :  { %v399_v34 = vadd.f32 %v398_v33, %v251_v29  ;;  %1028 = vmatprep.subr.mxu1 %v1006_v7  ;;  %v432_v45 = vsel %vm104_vm1, %v404_v37, -inf }
 0x2dd   :  { %v1001_v35 = vpop.f32.mrf.mxu1  ;;  %1029 = vmatpush3.msra.mxu1 %v1006_v7 }
 0x2de   :  { %1030 = vmatprep.subr.mxu1 %v604_v8  ;;  %v429_v38 = vsel %vm104_vm1, %v399_v34, -inf  ;;  %v414_v43 = vadd.f32 %v1001_v35, %v254_v40 }
 0x2df   :  { %v408_v41 = vpop.f32.mrf.mxu1  ;;  %430 = vmax.xlane.f32.xlu1 %v429_v38  ;;  %427 = vmax.xlane.f32.xlu0 %v426_v39 }
 0x2e0   :  { %v409_v42 = vadd.f32 %v408_v41, %v253_v36  ;;  %1031 = vmatpush3.msra.mxu1 %v604_v8  ;;  %v438_v46 = vsel %vm104_vm1, %v414_v43, -inf }
 0x2e2   :  { %v435_v44 = vsel %vm104_vm1, %v409_v42, -inf }
 0x2e3   :  { %436 = vmax.xlane.f32.xlu1 %v435_v44  ;;  %433 = vmax.xlane.f32.xlu0 %v432_v45 }
 0x2e7   :  { %439 = vmax.xlane.f32.xlu0 %v438_v46 }
 0x35e   :  { %v422_v47 = vpop.xlane.xlu1 %421 }
 0x35f   :  { %v442_v48 = vsub.f32 %v384_v18, %v422_v47 }
 0x360   :  { %v419_v49 = vpop.xlane.xlu0 %418 }
 0x361   :  { %v451_v50 = vmul.f32 1.442695, %v442_v48  ;;  %v441_v51 = vsub.f32 %v379_v20, %v419_v49 }
 0x363   :  { %1056 = vpow2.f32 %v451_v50  ;;  %v449_v52 = vmul.f32 1.442695, %v441_v51 }
 0x364   :  { %v425_v53 = vpop.xlane.xlu0 %424 }
 0x365   :  { %1058 = vpow2.f32 %v449_v52  ;;  %v443_v54 = vsub.f32 %v389_v27, %v425_v53 }
 0x367   :  { %v453_v55 = vmul.f32 1.442695, %v443_v54 }
 0x368   :  { %v428_v56 = vpop.xlane.xlu0 %427  ;;  %v431_v57 = vpop.xlane.xlu1 %430 }
 0x369   :  { %1060 = vpow2.f32 %v453_v55  ;;  %v444_v58 = vsub.f32 %v394_v30, %v428_v56  ;;  %v445_v59 = vsub.f32 %v399_v34, %v431_v57  ;;  %v864_v56 = vld [vmem:[%s1399_s5] ss:$0 sm:$0xff]  ;;  %s1168_s5 = scalar_lea.vmem %s819_s24, 256 }
 0x36a   :  { %p1169_p6 = scmp.ne.s32.totalorder %s819_s24, %s1168_s5  ;;  %p1174_p8 = scmp.lt.s32.totalorder %s1168_s5, %s1168_s5 }
 0x36b   :  { %v455_v60 = vmul.f32 1.442695, %v444_v58  ;;  %v457_v61 = vmul.f32 1.442695, %v445_v59 }
 0x36c   :  { %v434_v62 = vpop.xlane.xlu0 %433  ;;  %v437_v63 = vpop.xlane.xlu1 %436  ;;  %p1175_p9 = por %p1174_p8, %p1173_p7 }
 0x36d   :  { %1062 = vpow2.f32 %v455_v60  ;;  %v446_v0 = vsub.f32 %v404_v37, %v434_v62  ;;  %v447_v1 = vsub.f32 %v409_v42, %v437_v63 }
 0x36e   :  { %1064 = vpow2.f32 %v457_v61  ;;  %p1176_p10 = pnand %p1175_p9, %p1169_p6 }
 0x36f   :  { %v459_v2 = vmul.f32 1.442695, %v446_v0  ;;  %v461_v3 = vmul.f32 1.442695, %v447_v1 }
 0x370   :  { %v1057_v4 = vpop.eup %1056  ;;  %v440_v5 = vpop.xlane.xlu0 %439 }
 0x371   :  { %1066 = vpow2.f32 %v459_v2  ;;  %v448_v6 = vsub.f32 %v414_v43, %v440_v5  ;;  %v468_v7 = vsel %vm104_vm1, %v1057_v4, 0.0 }
 0x372   :  { %v1059_v8 = vpop.eup %1058  ;;  %1068 = vpow2.f32 %v461_v3  ;;  %469 = vadd.xlane.f32.xlu0 %v468_v7 }
 0x373   :  { %v463_v9 = vmul.f32 1.442695, %v448_v6  ;;  %v465_v10 = vsel %vm104_vm1, %v1059_v8, 0.0 }
 0x374   :  { %466 = vadd.xlane.f32.xlu1 %v465_v10 }
 0x375   :  { %1070 = vpow2.f32 %v463_v9 }
 0x376   :  { %v1061_v11 = vpop.eup %1060 }
 0x377   :  { %v471_v12 = vsel %vm104_vm1, %v1061_v11, 0.0 }
 0x378   :  { %472 = vadd.xlane.f32.xlu1 %v471_v12 }
 0x37a   :  { %v1063_v13 = vpop.eup %1062 }
 0x37b   :  { %v1065_v14 = vpop.eup %1064  ;;  %v474_v15 = vsel %vm104_vm1, %v1063_v13, 0.0 }
 0x37c   :  { %475 = vadd.xlane.f32.xlu0 %v474_v15  ;;  %v477_v16 = vsel %vm104_vm1, %v1065_v14, 0.0 }
 0x37d   :  { %478 = vadd.xlane.f32.xlu1 %v477_v16 }
 0x37e   :  { %v1067_v17 = vpop.eup %1066 }
 0x37f   :  { %v1069_v18 = vpop.eup %1068  ;;  %v480_v19 = vsel %vm104_vm1, %v1067_v17, 0.0 }
 0x380   :  { %481 = vadd.xlane.f32.xlu0 %v480_v19  ;;  %v483_v20 = vsel %vm104_vm1, %v1069_v18, 0.0 }
 0x381   :  { %484 = vadd.xlane.f32.xlu1 %v483_v20 }
 0x382   :  { %v1071_v21 = vpop.eup %1070 }
 0x383   :  { %v486_v22 = vsel %vm104_vm1, %v1071_v21, 0.0 }
 0x384   :  { %487 = vadd.xlane.f32.xlu0 %v486_v22 }
 0x3fb   :  { %v470_v23 = vpop.xlane.xlu0 %469 }
 0x3fc   :  { %1072 = vrcp.f32 %v470_v23 }
 0x3fd   :  { %v467_v24 = vpop.xlane.xlu1 %466 }
 0x3fe   :  { %1074 = vrcp.f32 %v467_v24 }
 0x401   :  { %v473_v25 = vpop.xlane.xlu1 %472 }
 0x402   :  { %1076 = vrcp.f32 %v473_v25 }
 0x405   :  { %v476_v26 = vpop.xlane.xlu0 %475 }
 0x406   :  { %1078 = vrcp.f32 %v476_v26  ;;  %v479_v27 = vpop.xlane.xlu1 %478 }
 0x407   :  { %1080 = vrcp.f32 %v479_v27 }
 0x409   :  { %v482_v28 = vpop.xlane.xlu0 %481  ;;  %v1073_v29 = vpop.eup %1072 }
 0x40a   :  { %1082 = vrcp.f32 %v482_v28  ;;  %v485_v30 = vpop.xlane.xlu1 %484  ;;  %v498_v33 = vmul.f32 %v1073_v29, %v1057_v4 }
 0x40b   :  { %v1075_v31 = vpop.eup %1074  ;;  %1084 = vrcp.f32 %v485_v30 }
 0x40c   :  { %v497_v32 = vmul.f32 %v1075_v31, %v1059_v8 }
 0x40d   :  { %v488_v34 = vpop.xlane.xlu0 %487 }
 0x40e   :  { %1086 = vrcp.f32 %v488_v34  ;;  %1032 = vmatprep.mubr.msk.f32.mxu1 %vm104_vm1, %v497_v32 }
 0x40f   :  { %v1077_v35 = vpop.eup %1076  ;;  %1033 = vmatmul.mubr.msk.f32.vlgmr.msra.gmra.mxu1 %vm104_vm1, %v498_v33 }
 0x410   :  { %v499_v36 = vmul.f32 %v1077_v35, %v1061_v11 }
 0x412   :  { %1035 = vmatprep.mubr.msk.f32.mxu1 %vm104_vm1, %v499_v36 }
 0x413   :  { %v1079_v37 = vpop.eup %1078 }
 0x414   :  { %v1081_v38 = vpop.eup %1080  ;;  %v500_v39 = vmul.f32 %v1079_v37, %v1063_v13 }
 0x415   :  { %v501_v40 = vmul.f32 %v1081_v38, %v1065_v14 }
 0x416   :  { %1036 = vmatmul.mubr.msk.f32.gmra.mxu1 %vm104_vm1, %v500_v39 }
 0x417   :  { %v1083_v41 = vpop.eup %1082  ;;  %1038 = vmatprep.mubr.msk.f32.mxu1 %vm104_vm1, %v501_v40 }
 0x418   :  { %v1085_v42 = vpop.eup %1084  ;;  %v502_v43 = vmul.f32 %v1083_v41, %v1067_v17 }
 0x419   :  { %v503_v44 = vmul.f32 %v1085_v42, %v1069_v18 }
 0x41a   :  { %1039 = vmatmul.mubr.msk.f32.gmra.mxu1 %vm104_vm1, %v502_v43 }
 0x41b   :  { %v1087_v45 = vpop.eup %1086  ;;  %1041 = vmatprep.mubr.msk.f32.mxu1 %vm104_vm1, %v503_v44 }
 0x41c   :  { %v504_v46 = vmul.f32 %v1087_v45, %v1071_v21 }
 0x41e   :  { %1042 = vmatmul.mubr.msk.f32.gmra.mxu1 %vm104_vm1, %v504_v46 }
 0x4cf   :  { %v1034_v47 = vpop.f32.mrf.mxu1 }
 0x4d0   :  { %v780_v60 = vadd.f32 %v1034_v47, %v864_v56 }
 0x4d1   :  { %v733_v48 = vpop.f32.mrf.mxu1 }
 0x4d2   :  { %v779_v58 = vadd.f32 %v864_v56, %v733_v48 }
 0x4d6   :  { %v1037_v49 = vpop.f32.mrf.mxu1 }
 0x4d7   :  { %785 = vrot.lane.b32.xlu0 %v1037_v49, %s1204_s3 }
 0x4d8   :  { %v743_v50 = vpop.f32.mrf.mxu1 }
 0x4d9   :  { %783 = vrot.lane.b32.xlu1 %v743_v50, %s1204_s3 }
 0x4da   :  { %v1040_v51 = vpop.f32.mrf.mxu1 }
 0x4dc   :  { %v753_v52 = vpop.f32.mrf.mxu1 }
 0x4dd   :  { %795 = vrot.lane.b32.xlu1 %v1040_v51, %s1202_s2 }
 0x4de   :  { %v1043_v53 = vpop.f32.mrf.mxu1 }
 0x4e0   :  { %v763_v54 = vpop.f32.mrf.mxu1 }
 0x4e1   :  { %793 = vrot.lane.b32.xlu1 %v753_v52, %s1202_s2  ;;  %803 = vrot.lane.b32.xlu0 %v763_v54, %s1203_s17 }
 0x4e5   :  { %805 = vrot.lane.b32.xlu1 %v1043_v53, %s1203_s17 }
 0x549   :  { %v786_v59 = vpop.permute.xlu0 %785 }
 0x54a   :  { %v790_v63 = vadd.f32 %v786_v59, %v780_v60 }
 0x54b   :  { %v784_v55 = vpop.permute.xlu1 %783 }
 0x54c   :  { %v789_v61 = vadd.f32 %v784_v55, %v779_v58 }
 0x54f   :  { %v796_v57 = vpop.permute.xlu1 %795 }
 0x550   :  { %v800_v2 = vadd.f32 %v796_v57, %v790_v63 }
 0x553   :  { %v794_v62 = vpop.permute.xlu1 %793  ;;  %v804_v1 = vpop.permute.xlu0 %803 }
 0x554   :  { %v799_v0 = vadd.f32 %v794_v62, %v789_v61 }
 0x556   :  { %v809_v3 = vadd.f32 %v804_v1, %v799_v0 }
 0x557   :  { %v806_v4 = vpop.permute.xlu1 %805 }
 0x558   :  { %811 = vst.msk [vmem:[#allocation10] sm:$0xff] %vm101_vm0, %v809_v3  ;;  %v810_v5 = vadd.f32 %v806_v4, %v800_v2 }
 0x55a   :  { %812 = vst.msk [vmem:[#allocation10 + $0x8] sm:$0xff] %vm101_vm0, %v810_v5 }
 0x55b   :  { %1179 = shalt.err (!%p1176_p10)
}
 0x55c   :  { %824 = dma.vmem_to_hbm [thread:$0]  %s819_s24, 256, %s1400_s6, [#allocation4], %s1198_s26, %s1198_s26, %s1199_s27  }
 0x55d   :  { %1194 = dma.done.wait [#allocation4], 256  }
 0x55e   :  { %1195 = vsyncadd [#allocation4], 4294967040 }
 0x55f   :  { %828 = vsyncpa [#allocation3], 1 }
 0x560   :  { %829 = vsyncpa [#allocation6], 1 }
 0x561   :  { %830 = vsyncpa [#allocation9], 1 }
 0x562   :  { %831 = vsyncpa [#allocation4], 1 }

</bundles_post_ra>
